<compile_context>
chip_gen: v7x
topology: tpu7x:2x2x1
jax: 0.10.0
libtpu: 0.0.40
codegen_flags: <defaults>
</compile_context>

<pallas_src>
import functools

import jax
import jax.numpy as jnp
from jax.experimental import pallas as pl
from jax.experimental.pallas import tpu as pltpu


def _embedding_lora_kernel(ids_ref,   # SMEM (chunk,) int32   (scalar prefetch)
                           w_hbm,     # HBM  (V_pad, E_pad)   embedding table
                           a_ref,     # VMEM (tb, r)          after_A rows (gathered in wrapper)
                           rt_ref,    # VMEM (r, E_pad)       pre-scaled lora_right.T
                           out_ref,   # VMEM (tb, E_pad)
                           w_buf,     # VMEM (2, tb, E_pad)   gathered embedding rows
                           sem_w,     # DMA sems (2,)
                           *, tb):
    i = pl.program_id(0)
    nsteps = pl.num_programs(0)
    slot = i % 2

    def issue(block_idx, buf_slot):
        base = block_idx * tb

        @pl.loop(0, tb)
        def _(t):
            tok = ids_ref[base + t]
            pltpu.make_async_copy(w_hbm.at[pl.ds(tok, 1)],
                                  w_buf.at[buf_slot, pl.ds(t, 1)],
                                  sem_w.at[buf_slot]).start()

    # Prime the pipeline with this call's first block.
    @pl.when(i == 0)
    def _():
        issue(0, 0)

    # Prefetch the next block's rows BEFORE the wait below (keeps the scalar
    # SMEM id reads clear of the semaphore wait) so the HBM gather overlaps
    # this block's compute + store.
    @pl.when(i + 1 < nsteps)
    def _():
        issue(i + 1, (i + 1) % 2)

    # Single aggregate wait: tb row copies of (1, E_pad) signal exactly the
    # same byte count as one (tb, E_pad) descriptor, so the per-slot
    # semaphore balances (src is a dummy slice; only dst size + sem matter).
    pltpu.make_async_copy(w_hbm.at[pl.ds(0, tb)], w_buf.at[slot],
                          sem_w.at[slot]).wait()

    # Rank-r LoRA correction (native dtype in, f32 accumulate on the MXU);
    # rt_ref is pre-scaled, so the epilogue is one fused add + cast pass.
    lora = jnp.dot(a_ref[...], rt_ref[...], preferred_element_type=jnp.float32)
    out_ref[...] = (w_buf[slot].astype(jnp.float32) + lora).astype(out_ref.dtype)


def embedding_lora_forward(ids, weight, lora_left, lora_right, lora_scaling=1.0,
                           *, token_block=256, max_tokens_per_call=8192):
    """ids: (B, S) int; weight: (V, E); lora_left: (r, V); lora_right: (E, r)."""
    B, S = ids.shape
    V, E = weight.shape
    r = lora_left.shape[0]
    scale = float(lora_scaling) / float(r)          # == module's self.lora_scaling
    out_dtype = weight.dtype

    itemsize = jnp.dtype(weight.dtype).itemsize
    min_tb = max(8, 32 // itemsize)                 # f32: 8, bf16: 16, int8/fp8: 32
    tb = int(token_block)
    assert tb % min_tb == 0, (
        f"token_block must be a multiple of {min_tb} for dtype {weight.dtype}")

    # Lane-dense table / output: pad the embedding dim to a multiple of 128.
    # TODO(synk): in production store the table pre-padded and the LoRA params
    # pre-transposed/scaled at init so this O(V*E) pad is off the hot path.
    E_pad = ((E + 127) // 128) * 128
    if E_pad != E:
        weight = jnp.pad(weight, ((0, 0), (0, E_pad - E)))
        lora_right = jnp.pad(lora_right, ((0, E_pad - E), (0, 0)))

    # The aggregate DMA-wait descriptor slices tb rows of the table; make sure
    # the table has at least tb rows (only ever triggers for toy vocabs).
    if V < tb:
        weight = jnp.pad(weight, ((0, tb - V), (0, 0)))

    # Pre-scaled / pre-cast LoRA-B: (r, E_pad) in the table's dtype.
    rt_scaled = (lora_right.T * scale).astype(weight.dtype)

    # Flatten + pad the token stream to a multiple of the token block.
    total = B * S
    total_pad = ((total + tb - 1) // tb) * tb
    ids_flat = ids.reshape(total).astype(jnp.int32)
    if total_pad != total:
        ids_flat = jnp.pad(ids_flat, (0, total_pad - total))   # pad with valid id 0

    # after_A rows are only r elements wide -> per-row DMAs for them are pure
    # descriptor overhead; gather once in the wrapper instead.
    after_a = lora_left.T.astype(weight.dtype)[ids_flat]        # (total_pad, r)

    # Bound the SMEM-resident (scalar-prefetched) id vector per pallas_call.
    chunk = max(tb, (int(max_tokens_per_call) // tb) * tb)

    # Explicit VMEM budget (scratch + double-buffered blocks) with headroom,
    # capped so it is valid on v7x (64 MiB) as well as v5e/v6e (128 MiB).
    out_item = jnp.dtype(out_dtype).itemsize
    vmem_need = (2 * tb * E_pad * itemsize          # w_buf scratch
                 + 2 * tb * E_pad * out_item        # double-buffered output blocks
                 + 2 * tb * 128 * itemsize          # double-buffered after_A blocks (lane padded)
                 + 2 * 8 * E_pad * itemsize)        # rt (sublane padded)
    vmem_limit = int(min(max(2 * vmem_need, 16 * 2**20), 64 * 2**20))

    def run_chunk(ids_chunk, a_chunk):
        nblk = ids_chunk.shape[0] // tb
        return pl.pallas_call(
            functools.partial(_embedding_lora_kernel, tb=tb),
            out_shape=jax.ShapeDtypeStruct((ids_chunk.shape[0], E_pad), out_dtype),
            grid_spec=pltpu.PrefetchScalarGridSpec(
                num_scalar_prefetch=1,
                grid=(nblk,),
                in_specs=[
                    pl.BlockSpec(memory_space=pl.ANY),                # embedding table in HBM
                    pl.BlockSpec((tb, r), lambda i, ids: (i, 0)),     # after_A rows (VMEM)
                    pl.BlockSpec((r, E_pad), lambda i, ids: (0, 0)),  # scaled lora_right.T
                ],
                out_specs=pl.BlockSpec((tb, E_pad), lambda i, ids: (i, 0)),
                scratch_shapes=[
                    pltpu.VMEM((2, tb, E_pad), weight.dtype),
                    pltpu.SemaphoreType.DMA((2,)),
                ],
            ),
            compiler_params=pltpu.CompilerParams(
                # Sequential grid: required by the manual cross-step prefetch.
                dimension_semantics=("arbitrary",),
                vmem_limit_bytes=vmem_limit,
            ),
        )(ids_chunk, weight, a_chunk, rt_scaled)

    if total_pad <= chunk:
        out_flat = run_chunk(ids_flat, after_a)
    else:
        outs = [run_chunk(ids_flat[s:s + chunk], after_a[s:s + chunk])
                for s in range(0, total_pad, chunk)]
        out_flat = jnp.concatenate(outs, axis=0)

    return out_flat[:total, :E].reshape(B, S, E)


if __name__ == "__main__":
    key = jax.random.PRNGKey(0)
    k_w, k_ids, k_l, k_r = jax.random.split(key, 4)

    # Small, module-consistent shapes.
    V, E = 64, 32        # num_embeddings (rows), embedding dim (columns)
    lora_dim = 4
    B, S = 2, 8
    lora_scaling = 1.0

    # Deterministic synthetic parameters.  NOTE: the PyTorch module zero-inits
    # lora_left_weight; small random values are used so the LoRA path is
    # actually exercised (same shapes as __init__).
    weight = jax.random.normal(k_w, (V, E), dtype=jnp.float32)
    lora_right = jax.random.uniform(k_r, (E, lora_dim), dtype=jnp.float32,
                                    minval=-0.5, maxval=0.5)   # (columns, lora_dim)
    lora_left = 0.1 * jax.random.normal(k_l, (lora_dim, V), dtype=jnp.float32)  # (lora_dim, rows)

    ids = jax.random.randint(k_ids, (B, S), 0, V, dtype=jnp.int32)

    # Small token_block so the 16-token demo exercises multiple grid steps
    # (prime + cross-step prefetch + aggregate wait). Default is 256.
    out = embedding_lora_forward(ids, weight, lora_left, lora_right,
                                 lora_scaling, token_block=8)
    out = jax.block_until_ready(out)

    # Pure-JAX reference of the PyTorch forward.
    scale = lora_scaling / lora_dim
    ref = weight[ids] + (lora_left.T[ids] @ lora_right.T) * scale

    assert out.shape == (B, S, E), out.shape
    assert jnp.allclose(out, ref, atol=1e-5, rtol=1e-5), "mismatch vs reference"

    print("KERNEL_OK")
</pallas_src>

<mosaic_0001>
module attributes {stable_mosaic.version = 11 : i64} {
  func.func @_embedding_lora_kernel(%arg0: i32, %arg1: memref<16xi32, #tpu.memory_space<smem>>, %arg2: memref<64x128xf32, #tpu.memory_space<any>>, %arg3: memref<8x4xf32, #tpu.memory_space<vmem>>, %arg4: memref<4x128xf32, #tpu.memory_space<vmem>>, %arg5: memref<8x128xf32, #tpu.memory_space<vmem>>, %arg6: memref<2x8x128xf32, #tpu.memory_space<vmem>>, %arg7: memref<2x!tpu.dma_semaphore, #tpu.memory_space<semaphore_mem>>) attributes {dimension_semantics = [#tpu.dimension_semantics<arbitrary>], iteration_bounds = array<i64: 2>, scalar_prefetch = 1 : i64, scratch_operands = 2 : i64, tpu.core_type = #tpu.core_type<tc>, window_params = [{}, {transform_indices = @transform_1, window_bounds = array<i64: 8, 4>}, {pipeline_mode = #tpu.pipeline_mode<synchronous>, transform_indices = @transform_2, window_bounds = array<i64: 4, 128>}, {transform_indices = @transform_3, window_bounds = array<i64: 8, 128>}]} {
    %c2_i32 = arith.constant 2 : i32
    %c0_i32 = arith.constant 0 : i32
    %0 = arith.cmpi eq, %c2_i32, %c0_i32 : i32
    %c1_i32 = arith.constant 1 : i32
    %1 = arith.select %0, %c1_i32, %c2_i32 : i32
    %2 = arith.remsi %arg0, %1 : i32
    %c0_i32_0 = arith.constant 0 : i32
    %3 = arith.cmpi ne, %2, %c0_i32_0 : i32
    %c0_i32_1 = arith.constant 0 : i32
    %4 = arith.cmpi slt, %2, %c0_i32_1 : i32
    %c0_i32_2 = arith.constant 0 : i32
    %5 = arith.cmpi slt, %1, %c0_i32_2 : i32
    %6 = arith.xori %4, %5 : i1
    %7 = arith.andi %6, %3 : i1
    %8 = arith.addi %2, %1 : i32
    %9 = arith.select %7, %8, %2 : i32
    %c0_i32_3 = arith.constant 0 : i32
    %10 = arith.cmpi eq, %arg0, %c0_i32_3 : i32
    %11 = arith.extui %10 : i1 to i32
    %c0_i32_4 = arith.constant 0 : i32
    %12 = arith.cmpi ne, %11, %c0_i32_4 : i32
    scf.if %12 {
      %c0_i32_19 = arith.constant 0 : i32
      %c8_i32 = arith.constant 8 : i32
      %30 = arith.addi %c0_i32_19, %c8_i32 : i32
      %c1_i32_20 = arith.constant 1 : i32
      scf.for %arg8 = %c0_i32_19 to %30 step %c1_i32_20  : i32 {
        %c1_i32_22 = arith.constant 1 : i32
        %31 = arith.muli %arg8, %c1_i32_22 : i32
        %c0_i32_23 = arith.constant 0 : i32
        %32 = arith.addi %c0_i32_23, %31 : i32
        %c0_i32_24 = arith.constant 0 : i32
        %33 = arith.addi %c0_i32_24, %32 : i32
        %34 = arith.index_cast %33 : i32 to index
        %35 = memref.load %arg1[%34] : memref<16xi32, #tpu.memory_space<smem>>
        %c0_i32_25 = arith.constant 0 : i32
        %c0_i32_26 = arith.constant 0 : i32
        %c0_i32_27 = arith.constant 0 : i32
        %36 = tpu.memref_slice %arg2[%35, %c0_i32_27] : memref<64x128xf32, #tpu.memory_space<any>> -> memref<1x128xf32, #tpu.memory_space<any>>
        %c0_i32_28 = arith.constant 0 : i32
        %37 = tpu.memref_slice %arg6[%c0_i32_25, %32, %c0_i32_28] : memref<2x8x128xf32, #tpu.memory_space<vmem>> -> memref<1x1x128xf32, #tpu.memory_space<vmem>>
        %38 = tpu.memref_squeeze %37 : memref<1x1x128xf32, #tpu.memory_space<vmem>> -> memref<1x128xf32, #tpu.memory_space<vmem>>
        %39 = tpu.memref_slice %arg7[%c0_i32_26] : memref<2x!tpu.dma_semaphore, #tpu.memory_space<semaphore_mem>> -> memref<1x!tpu.dma_semaphore, #tpu.memory_space<semaphore_mem>>
        %40 = tpu.memref_squeeze %39 : memref<1x!tpu.dma_semaphore, #tpu.memory_space<semaphore_mem>> -> memref<!tpu.dma_semaphore, #tpu.memory_space<semaphore_mem>>
        tpu.enqueue_dma source(%36 : memref<1x128xf32, #tpu.memory_space<any>>) target(%38 : memref<1x128xf32, #tpu.memory_space<vmem>>) target_semaphore(%40 : memref<!tpu.dma_semaphore, #tpu.memory_space<semaphore_mem>>)
      }
      %c8_i32_21 = arith.constant 8 : i32
    } else {
    }
    %c1_i32_5 = arith.constant 1 : i32
    %13 = arith.addi %arg0, %c1_i32_5 : i32
    %c2_i32_6 = arith.constant 2 : i32
    %14 = arith.cmpi slt, %13, %c2_i32_6 : i32
    %15 = arith.extui %14 : i1 to i32
    %c0_i32_7 = arith.constant 0 : i32
    %16 = arith.cmpi ne, %15, %c0_i32_7 : i32
    scf.if %16 {
      %c1_i32_19 = arith.constant 1 : i32
      %30 = arith.addi %arg0, %c1_i32_19 : i32
      %c1_i32_20 = arith.constant 1 : i32
      %31 = arith.addi %arg0, %c1_i32_20 : i32
      %c2_i32_21 = arith.constant 2 : i32
      %c0_i32_22 = arith.constant 0 : i32
      %32 = arith.cmpi eq, %c2_i32_21, %c0_i32_22 : i32
      %c1_i32_23 = arith.constant 1 : i32
      %33 = arith.select %32, %c1_i32_23, %c2_i32_21 : i32
      %34 = arith.remsi %31, %33 : i32
      %c0_i32_24 = arith.constant 0 : i32
      %35 = arith.cmpi ne, %34, %c0_i32_24 : i32
      %c0_i32_25 = arith.constant 0 : i32
      %36 = arith.cmpi slt, %34, %c0_i32_25 : i32
      %c0_i32_26 = arith.constant 0 : i32
      %37 = arith.cmpi slt, %33, %c0_i32_26 : i32
      %38 = arith.xori %36, %37 : i1
      %39 = arith.andi %38, %35 : i1
      %40 = arith.addi %34, %33 : i32
      %41 = arith.select %39, %40, %34 : i32
      %c8_i32 = arith.constant 8 : i32
      %42 = arith.muli %30, %c8_i32 : i32
      %c0_i32_27 = arith.constant 0 : i32
      %c8_i32_28 = arith.constant 8 : i32
      %43 = arith.addi %c0_i32_27, %c8_i32_28 : i32
      %c1_i32_29 = arith.constant 1 : i32
      scf.for %arg8 = %c0_i32_27 to %43 step %c1_i32_29  : i32 {
        %c1_i32_31 = arith.constant 1 : i32
        %44 = arith.muli %arg8, %c1_i32_31 : i32
        %c0_i32_32 = arith.constant 0 : i32
        %45 = arith.addi %c0_i32_32, %44 : i32
        %46 = arith.addi %42, %45 : i32
        %47 = arith.index_cast %46 : i32 to index
        %48 = memref.load %arg1[%47] : memref<16xi32, #tpu.memory_space<smem>>
        %c0_i32_33 = arith.constant 0 : i32
        %49 = tpu.memref_slice %arg2[%48, %c0_i32_33] : memref<64x128xf32, #tpu.memory_space<any>> -> memref<1x128xf32, #tpu.memory_space<any>>
        %c0_i32_34 = arith.constant 0 : i32
        %50 = tpu.memref_slice %arg6[%41, %45, %c0_i32_34] : memref<2x8x128xf32, #tpu.memory_space<vmem>> -> memref<1x1x128xf32, #tpu.memory_space<vmem>>
        %51 = tpu.memref_squeeze %50 : memref<1x1x128xf32, #tpu.memory_space<vmem>> -> memref<1x128xf32, #tpu.memory_space<vmem>>
        %52 = tpu.memref_slice %arg7[%41] : memref<2x!tpu.dma_semaphore, #tpu.memory_space<semaphore_mem>> -> memref<1x!tpu.dma_semaphore, #tpu.memory_space<semaphore_mem>>
        %53 = tpu.memref_squeeze %52 : memref<1x!tpu.dma_semaphore, #tpu.memory_space<semaphore_mem>> -> memref<!tpu.dma_semaphore, #tpu.memory_space<semaphore_mem>>
        tpu.enqueue_dma source(%49 : memref<1x128xf32, #tpu.memory_space<any>>) target(%51 : memref<1x128xf32, #tpu.memory_space<vmem>>) target_semaphore(%53 : memref<!tpu.dma_semaphore, #tpu.memory_space<semaphore_mem>>)
      }
      %c8_i32_30 = arith.constant 8 : i32
    } else {
    }
    %c0_i32_8 = arith.constant 0 : i32
    %c0_i32_9 = arith.constant 0 : i32
    %17 = tpu.memref_slice %arg2[%c0_i32_8, %c0_i32_9] : memref<64x128xf32, #tpu.memory_space<any>> -> memref<8x128xf32, #tpu.memory_space<any>>
    %c0_i32_10 = arith.constant 0 : i32
    %c0_i32_11 = arith.constant 0 : i32
    %18 = tpu.memref_slice %arg6[%9, %c0_i32_10, %c0_i32_11] : memref<2x8x128xf32, #tpu.memory_space<vmem>> -> memref<1x8x128xf32, #tpu.memory_space<vmem>>
    %19 = tpu.memref_squeeze %18 : memref<1x8x128xf32, #tpu.memory_space<vmem>> -> memref<8x128xf32, #tpu.memory_space<vmem>>
    %20 = tpu.memref_slice %arg7[%9] : memref<2x!tpu.dma_semaphore, #tpu.memory_space<semaphore_mem>> -> memref<1x!tpu.dma_semaphore, #tpu.memory_space<semaphore_mem>>
    %21 = tpu.memref_squeeze %20 : memref<1x!tpu.dma_semaphore, #tpu.memory_space<semaphore_mem>> -> memref<!tpu.dma_semaphore, #tpu.memory_space<semaphore_mem>>
    tpu.wait_dma2 semaphore(%21 : memref<!tpu.dma_semaphore, #tpu.memory_space<semaphore_mem>>) src(%17 : memref<8x128xf32, #tpu.memory_space<any>>) dst(%19 : memref<8x128xf32, #tpu.memory_space<vmem>>)
    %c0 = arith.constant 0 : index
    %c0_12 = arith.constant 0 : index
    %22 = vector.load %arg3[%c0, %c0_12] : memref<8x4xf32, #tpu.memory_space<vmem>>, vector<8x4xf32>
    %c0_13 = arith.constant 0 : index
    %c0_14 = arith.constant 0 : index
    %23 = vector.load %arg4[%c0_13, %c0_14] : memref<4x128xf32, #tpu.memory_space<vmem>>, vector<4x128xf32>
    %cst = arith.constant dense<0.000000e+00> : vector<8x128xf32>
    %24 = tpu.matmul %22, %23, %cst {dimension_numbers = #tpu.dot_dimension_numbers<[1], [0], [0], [1], [0, 0, 1, 1], [], []>} : vector<8x4xf32>, vector<4x128xf32>, vector<8x128xf32> -> vector<8x128xf32>
    %25 = arith.index_cast %9 : i32 to index
    %c0_15 = arith.constant 0 : index
    %c0_16 = arith.constant 0 : index
    %26 = vector.load %arg6[%25, %c0_15, %c0_16] : memref<2x8x128xf32, #tpu.memory_space<vmem>>, vector<1x8x128xf32>
    %27 = vector.shape_cast %26 : vector<1x8x128xf32> to vector<8x128xf32>
    %28 = arith.addf %27, %24 : vector<8x128xf32>
    %c0_17 = arith.constant 0 : index
    %c0_18 = arith.constant 0 : index
    %29 = vector.load %arg5[%c0_17, %c0_18] : memref<8x128xf32, #tpu.memory_space<vmem>>, vector<8x128xf32>
    tpu.vector_store %arg5[%c0_17, %c0_18], %28 {strides = array<i32>} : memref<8x128xf32, #tpu.memory_space<vmem>>, vector<8x128xf32>,
    return
  }
  func.func @transform_1(%arg0: i32, %arg1: memref<16xi32, #tpu.memory_space<smem>>) -> (i32, i32) {
    %c0_i32 = arith.constant 0 : i32
    %c0_i32_0 = arith.constant 0 : i32
    return %arg0, %c0_i32 : i32, i32
  }
  func.func @transform_2(%arg0: i32, %arg1: memref<16xi32, #tpu.memory_space<smem>>) -> (i32, i32) {
    %c0_i32 = arith.constant 0 : i32
    %c0_i32_0 = arith.constant 0 : i32
    %c0_i32_1 = arith.constant 0 : i32
    return %c0_i32, %c0_i32_0 : i32, i32
  }
  func.func @transform_3(%arg0: i32, %arg1: memref<16xi32, #tpu.memory_space<smem>>) -> (i32, i32) {
    %c0_i32 = arith.constant 0 : i32
    %c0_i32_0 = arith.constant 0 : i32
    return %arg0, %c0_i32 : i32, i32
  }
}

</mosaic_0001>

<bundles_post_ra>
// kernel: tpu_custom_call.1
= control target key start
LH: loop header
LB: loop body
LE: loop exit
PB: predicated region body
PF: predicated region fallthrough
CT: control target
= control target key end

     0   :  { %s868_s0 = inlined_call_operand.vmem [shape: s32[16], index: 0, kind: input, shape index: {}]   ;;  %s869_s1 = inlined_call_operand.hbm [shape: f32[64,128], index: 1, kind: input, shape index: {}]   ;;  %s870_s2 = inlined_call_operand.vmem [shape: f32[16,4], index: 2, kind: input, shape index: {}]   ;;  %s871_s3 = inlined_call_operand.vmem [shape: f32[4,128], index: 3, kind: input, shape index: {}]   ;;  %s872_s4 = inlined_call_operand.hbm [shape: f32[16,128], index: 4, kind: output, shape index: {}]  }
   0x1   :  { %878 = sst [smem:[#allocation21_spill]] %s870_s2  ;;  %s9_s17 = sshll.u32 %s868_s0, 4  ;;  %s10_s17 = int_to_ptr.vmem [resolvable:$true] %s9_s17 }
   0x2   :  { %s518_s18 = scalar_lea.vmem %s10_s17, 16  ;;  %p523_p1 = scmp.lt.s32.totalorder %s10_s17, %s10_s17 }
   0x3   :  { %p519_p0 = scmp.ne.s32.totalorder %s10_s17, %s518_s18  ;;  %p524_p2 = scmp.lt.s32.totalorder %s518_s18, %s518_s18 }
   0x5   :  { %p525_p3 = por %p524_p2, %p523_p1 }
   0x7   :  { %p526_p4 = pnand %p525_p3, %p519_p0 }
   0x9   :  { %529 = shalt.err (!%p526_p4)  }
   0xa   :  { %s662_s19 = smov [#allocation5]  }
   0xb   :  { %12 = dma.vmem_to_smem %s10_s17, 16, %s662_s19, [#allocation4] }
   0xc   :  { %630 = dma.done.wait [#allocation4], 16 }
   0xd   :  { %631 = vsyncadd [#allocation4], 4294967280 }
   0xe   :  { %14 = sfence }
   0xf   :  { %15 = vsyncpa [#allocation7], 0 }
  0x10   :  { %17 = vsyncpa [#allocation7 + $0x1], 0  ;;  %s696_s20 = smov 0   ;;  %s698_s21 = smov 0  }
  0x11   :  { %s700_s0 = smov 0   ;;  %s702_s22 = smov 0  }
  0x12 LB: > { %879 = sst [smem:[#allocation17_spill]] %s648_s0  ;;  %s717_s23 = sadd.s32 4294967295, %s652_s22   ;;  %s652_s22 = sphi %s702_s22, %s891_s22   ;;  %s648_s0 = sphi %s700_s0, %s893_s0   ;;  %s644_s21 = sphi %s698_s21, %s895_s21   ;;  %s640_s20 = sphi %s696_s20, %s894_s20  }
  0x13   : > { %s424_s24 = sadd.s32 4294967294, %s652_s22   ;;  %s721_s25 = sadd.s32 1, %s652_s22  }
  0x14   : > { %880 = sst [smem:[#allocation18_spill]] %s721_s25  ;;  %s77_s26 = sadd.s32 1, %s648_s0 }
  0x15   : > { %s74_s27 = ssub.s32 %s652_s22, %s721_s25  ;;  %p87_p5 = scmp.ne.s32.totalorder %s648_s0, %s644_s21 }
  0x16   : > { %p75_p6 = scmp.eq.s32.totalorder %s74_s27, 0  ;;  %p88_p7 = scmp.eq.s32.totalorder %s717_s23, 1 }
  0x17   : > { %p93_p8 = scmp.ne.s32.totalorder %s644_s21, %s640_s20  ;;  %p94_p9 = scmp.eq.s32.totalorder %s424_s24, 1 }
  0x18   : > { %s732_s28 = scalar_select %p75_p6, %s648_s0, %s77_s26  }
  0x19   : > { %p734_p10 = por %p88_p7, %p87_p5  ;;  %p738_p11 = por %p94_p9, %p93_p8 }
  0x1a   : > { %881 = sst [smem:[#allocation19_spill]] %s732_s28  ;;  %p427_p12 = scmp.ge.s32.totalorder %s652_s22, 1 }
  0x1b   : > { %s883_s30 = scalar_select %p738_p11, 1, 0 }
  0x1c   : > { %p122_p13 = scmp.lt.s32.totalorder %s652_s22, 3 }
  0x1d   : > { %884 = sst [smem:[#allocation20_spill]] %s883_s30 }
  0x1e   : > { %p123_p0 = pnand %p427_p12, %p122_p13 }
  0x1f   : > { %s873_s5 = sand.u32 (!%p123_p0), 1, %s644_s21   ;;  %p143_p1 = scmp.lt.s32.totalorder (!%p123_p0), %s717_s23, 1 }
  0x20   : > { %126 = sbr.rel (%p123_p0) target bundleno = 374 (0x176), region = 28  ;;  %s748_s6 = sshll.u32 (!%p123_p0), %s873_s5, 3 }
  0x21   : > { %p147_p2 = scmp.lt.s32.totalorder (!%p123_p0), %s717_s23, 0  ;;  %s148_s7 = ssub.s32 (!%p123_p0), 0, %s717_s23 }
  0x22   : > { %s430_s9 = smin.u32 (!%p123_p0), %s717_s23, %s148_s7  ;;  %s885_s2 = sld [smem:[#allocation21_spill]] (!%p123_p0) }
  0x23   : > { %s150_s11 = sand.u32 (!%p123_p0), 1, %s430_s9   ;;  %p433_p4 = scmp.ne.s32.totalorder (!%p123_p0), %s717_s23, 0 }
  0x24   : > { %s151_s15 = ssub.s32 (!%p123_p0), 0, %s150_s11 }
  0x27   : > { %s144_s8 = scalar_select %p143_p1, %s717_s23, 1 }
  0x28   : > { %s897_s15 = smov (!%p147_p2, %s151_s15), %s150_s11  ;;  %162 = sbr.rel (%p433_p4) target bundleno = 86 (0x56), region = 32 }
  0x29   : > { %s429_s10 = sshll.u32 %s144_s8, 3  ;;  %p432_p3 = scmp.lt.s32.totalorder %s897_s15, 0 }
  0x2a   : > { %s757_s14 = scalar_lea.vmem %s885_s2, %s429_s10  ;;  %s157_s16 = sadd.s32 2, %s897_s15 }
  0x2b   : > { %s899_s16 = smov (!%p432_p3, %s157_s16), %s897_s15  ;;  %s763_s18 = smov (!%p433_p4), 0  }
  0x2f LB: >> { %s169_s19 = sld [smem:[#allocation5 + %s656_s18]]  ;;  %s172_s24 = scalar_lea.vmem [#allocation2], %s656_s18  ;;  %s656_s18 = sphi %s763_s18, %s168_s18  }
  0x30   : >> { %s180_s26 = sshll.u32 %s172_s24, 4  ;;  %s532_s13 = scalar_lea.hbm %s869_s1, 1024  ;;  %s181_s26 = int_to_ptr.vmem [resolvable:$true] %s180_s26 }
  0x35   : >> { %s434_s27 = sshll.u32 %s169_s19, 4 }
  0x36   : >> { %s171_s9 = scalar_lea.hbm %s869_s1, %s434_s27 }
  0x37   : >> { %s530_s10 = scalar_lea.hbm %s171_s9, 16  ;;  %p533_p6 = scmp.lt.u32.totalorder %s171_s9, %s869_s1 }
  0x38   : >> { %p531_p5 = scmp.ne.s32.totalorder %s171_s9, %s530_s10  ;;  %p534_p7 = scmp.lt.u32.totalorder %s532_s13, %s530_s10 }
  0x39   : >> { %p536_p9 = scmp.lt.u32.totalorder %s530_s10, %s171_s9 }
  0x3a   : >> { %p535_p8 = por %p534_p7, %p533_p6 }
  0x3c   : >> { %p537_p12 = por %p536_p9, %p535_p8 }
  0x3e   : >> { %p538_p13 = pnand %p537_p12, %p531_p5 }
  0x40   : >> { %541 = shalt.err (!%p538_p13)  }
  0x41   : >> { %s542_s19 = scalar_lea.vmem %s181_s26, 16  ;;  %s663_s24 = smov [#allocation2]  }
  0x42   : >> { %p543_p0 = scmp.ne.s32.totalorder %s181_s26, %s542_s19  ;;  %s544_s27 = sshll.u32 %s663_s24, 4  ;;  %s545_s27 = int_to_ptr.vmem [resolvable:$false] %s544_s27 }
  0x43   : >> { %s546_s7 = scalar_lea.vmem %s545_s27, 256  ;;  %p547_p1 = scmp.lt.s32.totalorder %s181_s26, %s545_s27 }
  0x44   : >> { %p548_p2 = scmp.lt.s32.totalorder %s546_s7, %s542_s19 }
  0x46   : >> { %p549_p3 = por %p548_p2, %p547_p1 }
  0x48   : >> { %p550_p4 = pnand %p549_p3, %p543_p0 }
  0x4a   : >> { %553 = shalt.err (!%p550_p4)  }
  0x4b   : >> { %183 = dma.hbm_to_vmem [thread:$0]  %s171_s9, 16, %s181_s26, [#allocation3] }
  0x4c   : >> { %s168_s18 = sadd.s32 1, %s656_s18  }
  0x4d   : >> { %p165_p11 = scmp.ge.s32.totalorder %s168_s18, 8  }
  0x4f   : > { %167 = sbr.rel (!%p165_p11) target bundleno = 47 (0x2f), region = 101 }
  0x56 PF: > { %s184_s5 = sadd.s32 1, %s717_s23 }
  0x57   : > { %p435_p5 = scmp.ge.s32.totalorder %s184_s5, 2 }
  0x58   : > { %p189_p6 = scmp.lt.s32.totalorder (!%p435_p5), %s184_s5, 0  ;;  %s190_s8 = ssub.s32 (!%p435_p5), 0, %s184_s5 }
  0x59   : > { %188 = sbr.rel (%p435_p5) target bundleno = 140 (0x8c), region = 47  ;;  %s436_s10 = smin.u32 (!%p435_p5), %s190_s8, %s184_s5 }
  0x5a   : > { %s451_s11 = sshll.u32 (!%p435_p5), %s717_s23, 3  ;;  %s192_s12 = sand.u32 (!%p435_p5), 1, %s436_s10  }
  0x5b   : > { %s784_s13 = sadd.s32 (!%p435_p5), 8, %s451_s11  ;;  %s193_s26 = ssub.s32 (!%p435_p5), 0, %s192_s12 }
  0x5c   : > { %s788_s18 = smov (!%p435_p5), 0  }
  0x60   : > { %s901_s26 = smov (!%p189_p6, %s193_s26), %s192_s12 }
  0x61   : > { %p438_p7 = scmp.lt.s32.totalorder %s901_s26, 0  ;;  %s199_s9 = sadd.s32 2, %s901_s26 }
  0x63   : > { %s903_s9 = smov (!%p438_p7, %s199_s9), %s901_s26 }
  0x64 LB: >> { %s441_s15 = sshll.u32 %s903_s9, 3  ;;  %s208_s19 = sadd.s32 %s660_s18, %s784_s13  ;;  %s660_s18 = sphi %s788_s18, %s207_s18  }
  0x65   : >> { %s213_s24 = sadd.s32 %s660_s18, %s441_s15  ;;  %s209_s27 = sld [smem:[#allocation5 + %s208_s19]] }
  0x66   : >> { %s214_s7 = scalar_lea.vmem [#allocation2], %s213_s24  ;;  %s215_s26 = scalar_lea.sflag [#allocation3], %s903_s9 }
  0x67   : >> { %s223_s5 = sshll.u32 %s214_s7, 4  ;;  %s556_s0 = scalar_lea.hbm %s869_s1, 1024  ;;  %s224_s5 = int_to_ptr.vmem [resolvable:$true] %s223_s5 }
  0x6b   : >> { %s440_s8 = sshll.u32 %s209_s27, 4 }
  0x6c   : >> { %s211_s12 = scalar_lea.hbm %s869_s1, %s440_s8 }
  0x6d   : >> { %s554_s17 = scalar_lea.hbm %s211_s12, 16  ;;  %p557_p8 = scmp.lt.u32.totalorder %s211_s12, %s869_s1 }
  0x6e   : >> { %p555_p11 = scmp.ne.s32.totalorder %s211_s12, %s554_s17  ;;  %p558_p9 = scmp.lt.u32.totalorder %s556_s0, %s554_s17 }
  0x6f   : >> { %p560_p13 = scmp.lt.u32.totalorder %s554_s17, %s211_s12 }
  0x70   : >> { %p559_p12 = por %p558_p9, %p557_p8 }
  0x72   : >> { %p561_p0 = por %p560_p13, %p559_p12 }
  0x74   : >> { %p562_p1 = pnand %p561_p0, %p555_p11 }
  0x76   : >> { %565 = shalt.err (!%p562_p1)  }
  0x77   : >> { %s566_s15 = scalar_lea.vmem %s224_s5, 16  ;;  %s664_s19 = smov [#allocation2]  }
  0x78   : >> { %p567_p2 = scmp.ne.s32.totalorder %s224_s5, %s566_s15  ;;  %s568_s24 = sshll.u32 %s664_s19, 4  ;;  %s569_s24 = int_to_ptr.vmem [resolvable:$false] %s568_s24 }
  0x79   : >> { %s570_s27 = scalar_lea.vmem %s569_s24, 256  ;;  %p571_p3 = scmp.lt.s32.totalorder %s224_s5, %s569_s24 }
  0x7a   : >> { %p572_p4 = scmp.lt.s32.totalorder %s570_s27, %s566_s15 }
  0x7c   : >> { %p573_p5 = por %p572_p4, %p571_p3 }
  0x7e   : >> { %p574_p6 = pnand %p573_p5, %p567_p2 }
  0x80   : >> { %577 = shalt.err (!%p574_p6)  }
  0x81   : >> { %226 = dma.hbm_to_vmem [thread:$0]  %s211_s12, 16, %s224_s5, %s215_s26 }
  0x82   : >> { %s207_s18 = sadd.s32 1, %s660_s18  }
  0x83   : >> { %p204_p7 = scmp.ge.s32.totalorder %s207_s18, 8  }
  0x85   : > { %206 = sbr.rel (!%p204_p7) target bundleno = 100 (0x64), region = 112 }
  0x8c PF: > { %s442_s2 = sshll.u32 %s899_s16, 3  ;;  %s229_s25 = scalar_lea.sflag [#allocation3], %s899_s16 }
  0x8d   : > { %s228_s0 = scalar_lea.vmem [#allocation2], %s442_s2 }
  0x8e   : > { %632 = dma.done.wait %s229_s25, 128 }
  0x8f   : > { %633 = vsyncadd %s229_s25, 4294967168  ;;  %v665_v0 = vmov 0.0   ;;  %vm666_vm0 = vmmov 0   ;;  %vm239_vm1 = vcmask 1043456   ;;  %vm235_vm2 = vcmask 31744   ;;  %v233_v2 = vld [vmem:[%s757_s14] sm:$0xff] }
  0x90   : > { %455 = vmatprep.subr.mxu0 %v665_v0  ;;  %457 = vmatprep.mubr.msk.f32.mxu0 %vm666_vm0, %v665_v0  ;;  %v234_v1 = vld [vmem:[%s871_s3] sm:$0xf]  ;;  %s446_s16 = sshll.u32 %s717_s23, 7  ;;  %s886_s17 = scalar_lea.vmem [#allocation6], %s748_s6 }
  0x91   : > { %456 = vmatpush3.msk.msra.mxu0 %vm239_vm1, %v234_v1  ;;  %v313_v3 = vld [vmem:[%s228_s0] sm:$0xff]  ;;  %s330_s13 = sshll.u32 %s886_s17, 4  ;;  %s822_s7 = scalar_lea.hbm %s872_s4, %s446_s16  ;;  %s824_s13 = int_to_ptr.vmem [resolvable:$true] %s330_s13 }
  0x92   : > { %458 = vmatmul.mubr.msk.f32.vlgmr.msra.gmra.mrb[0].mxu0 %vm235_vm2, %v233_v2  ;;  %s887_s5 = smov %s886_s17  ;;  %s888_s14 = sand.u32 1, %s644_s21  }
  0x93   : > { %s317_s8 = scalar_lea.sflag [#allocation7], %s888_s14  ;;  %s578_s23 = scalar_lea.vmem %s824_s13, 128 }
  0x94   : > { %p579_p11 = scmp.ne.s32.totalorder %s824_s13, %s578_s23  ;;  %s667_s10 = smov [#allocation6]  }
  0x95   : > { %s582_s11 = sshll.u32 %s667_s10, 4  ;;  %s583_s11 = int_to_ptr.vmem [resolvable:$false] %s582_s11 }
  0x96   : > { %p580_p8 = pnand %p579_p11, %p734_p10  ;;  %s584_s12 = scalar_lea.vmem %s583_s11, 256 }
  0x97   : > { %p585_p12 = scmp.lt.s32.totalorder %s824_s13, %s583_s11  ;;  %p586_p13 = scmp.lt.s32.totalorder %s584_s12, %s578_s23 }
  0x98   : > { %p581_p9 = pneg %p580_p8 }
  0x99   : > { %p587_p0 = por %p586_p13, %p585_p12 }
  0x9b   : > { %p588_p1 = pnand %p587_p0, %p581_p9 }
 0x165   : > { %v309_v4 = vpop.f32.mrb[0].mxu0 }
 0x166   : > { %v314_v5 = vadd.f32 %v313_v3, %v309_v4  ;;  %v459_v6 = vpop.f32.mrb[1].mxu0 }
 0x168   : > { %315 = vst [vmem:[%s887_s5] sm:$0xff] %v314_v5 }
 0x169   : > { %591 = shalt.err (!%p588_p1)
}
 0x16a   : > { %s592_s6 = scalar_lea.hbm %s822_s7, 128  ;;  %s596_s19 = scalar_lea.hbm %s872_s4, 256 }
 0x16b   : > { %p593_p2 = scmp.ne.s32.totalorder %s822_s7, %s592_s6  ;;  %p597_p5 = scmp.lt.u32.totalorder %s822_s7, %s872_s4 }
 0x16c   : > { %p598_p6 = scmp.lt.u32.totalorder %s596_s19, %s592_s6  ;;  %p600_p11 = scmp.lt.u32.totalorder %s592_s6, %s822_s7 }
 0x16d   : > { %p594_p3 = pnand %p593_p2, %p734_p10 }
 0x16e   : > { %p599_p7 = por %p598_p6, %p597_p5 }
 0x16f   : > { %p595_p4 = pneg %p594_p3 }
 0x170   : > { %p601_p8 = por %p600_p11, %p599_p7 }
 0x172   : > { %p602_p9 = pnand %p601_p8, %p595_p4 }
 0x174   : > { %605 = shalt.err (!%p602_p9)
}
 0x175   : > { %460 = dma.vmem_to_hbm [thread:$0]  (%p734_p10), %s824_s13, 128, %s822_s7, %s317_s8  }
 0x176 PF: > { %s889_s2 = sld [smem:[#allocation20_spill]]  ;;  %p466_p12 = scmp.ge.s32.totalorder %s652_s22, 2 }
 0x177   : > { %s342_s0 = sand.u32 1, %s640_s20  }
 0x178   : > { %s343_s25 = scalar_lea.sflag [#allocation7], %s342_s0 }
 0x17c   : > { %p890_p13 = scmp.ne.s32.totalorder %s889_s2, 0 }
 0x17e   : > { %p463_p0 = pnand %p466_p12, %p890_p13 }
 0x180   : > { %635 = dma.done.wait (!%p463_p0), %s343_s25, 128  }
 0x181   : > { %637 = vsyncadd (!%p463_p0), %s343_s25, 4294967168  ;;  %s891_s22 = sld [smem:[#allocation18_spill]]  ;;  %s892_s28 = sld [smem:[#allocation17_spill]] }
 0x182   : > { %s893_s0 = sld [smem:[#allocation19_spill]]  ;;  %s894_s20 = smov %s644_s21 }
 0x187   : > { %p20_p1 = scmp.ge.s32.totalorder %s891_s22, 4   ;;  %s895_s21 = smov %s892_s28 }
 0x189   :  { %22 = sbr.rel (!%p20_p1) target bundleno = 18 (0x12), region = 123 }
 0x190   :  { %348 = vsyncpa [#allocation7], 1 }
 0x191   :  { %350 = vsyncpa [#allocation7 + $0x1], 1 }
 0x192   :  { %351 = vsyncmov [#allocation3] }
 0x195   :  { %s352_s29 = vpop.sfrf %351 }
 0x196   :  { %p449_p10 = scmp.ne.s32.totalorder %s352_s29, 0 }
 0x198   :  { %356 = shalt.err (%p449_p10)  }
 0x199   :  { %358 = vsyncmov [#allocation3 + $0x1] }
 0x19c   :  { %s359_s30 = vpop.sfrf %358 }
 0x19d   :  { %p450_p2 = scmp.ne.s32.totalorder %s359_s30, 0 }
 0x19f   :  { %363 = shalt.err (%p450_p2)  }

</bundles_post_ra>
